<compile_context>
chip_gen: v7x
topology: tpu7x:2x2x1
jax: 0.10.0
libtpu: 0.0.40
codegen_flags: <defaults>
</compile_context>

<pallas_src>
import functools

import jax
import jax.numpy as jnp
from jax import lax
from jax.experimental import pallas as pl
from jax.experimental.pallas import tpu as pltpu


_MAX_UNROLL_STEPS = 32  # fully unroll the in-kernel time loop below this


def _stacked_lstm_kernel(dims, seq_len, *refs):
    """Fused stacked-LSTM forward.

    dims:    static tuple of (input_dim, hidden_dim) per layer.
    seq_len: static number of time steps.
    refs:    x_ref (T,B,D0),
             [w_cat_i (D_i+H_i, 4H_i), bias_i (1, 4H_i)] for each layer,
             out_ref (B, H_last),
             seq_scratch_i (T, B, H_i) for every layer except the last.
    """
    num_layers = len(dims)
    x_ref = refs[0]
    w_refs = refs[1:1 + 2 * num_layers]
    out_ref = refs[1 + 2 * num_layers]
    seq_refs = refs[2 + 2 * num_layers:]

    batch = x_ref.shape[1]
    in_ref = x_ref
    for li, (_, hidden) in enumerate(dims):
        is_last = li == num_layers - 1

        # Hoisted out of the time loop: fused weight load + bias broadcast.
        w_cat = w_refs[2 * li][...]                                 # (D+H, 4H)
        op_dtype = w_cat.dtype
        bias = jnp.broadcast_to(
            w_refs[2 * li + 1][...].astype(jnp.float32), (batch, 4 * hidden))

        def cell(t, h_prev, c_prev):
            x_t = in_ref[t]                                          # (B, D)
            # Single fused gate matmul: [x_t, h_prev] @ [W_ih^T ; W_hh^T].
            xh = jnp.concatenate(
                [x_t.astype(jnp.float32), h_prev], axis=-1).astype(op_dtype)
            gates = jnp.dot(xh, w_cat,
                            preferred_element_type=jnp.float32) + bias
            i_g = jax.nn.sigmoid(gates[:, 0 * hidden:1 * hidden])
            f_g = jax.nn.sigmoid(gates[:, 1 * hidden:2 * hidden])
            g_g = jnp.tanh(gates[:, 2 * hidden:3 * hidden])
            o_g = jax.nn.sigmoid(gates[:, 3 * hidden:4 * hidden])
            c_new = f_g * c_prev + i_g * g_g
            h_new = o_g * jnp.tanh(c_new)
            return h_new, c_new

        h = jnp.zeros((batch, hidden), jnp.float32)
        c = jnp.zeros((batch, hidden), jnp.float32)

        if seq_len <= _MAX_UNROLL_STEPS:
            # Static unroll: LLO scheduler sees the whole recurrence.
            for t in range(seq_len):
                h, c = cell(t, h, c)
                if not is_last:
                    seq_refs[li][t] = h.astype(seq_refs[li].dtype)
        else:
            def body(t, carry):
                h_new, c_new = cell(t, *carry)
                if not is_last:
                    seq_refs[li][t] = h_new.astype(seq_refs[li].dtype)
                return h_new, c_new
            h, c = lax.fori_loop(0, seq_len, body, (h, c))

        if is_last:
            # Module discards everything but the final hidden state.
            out_ref[...] = h.astype(out_ref.dtype)
        else:
            in_ref = seq_refs[li]


def lstm_stack_forward(x, packed, dims, compute_dtype=jnp.bfloat16):
    """x: (B, T, D0), batch_first.  packed: [(w_cat, bias)] per layer.

    Returns the last-time-step hidden state of the last layer: (B, H_last) f32.
    """
    batch, seq_len, _ = x.shape
    dims = tuple(tuple(d) for d in dims)
    h_last = dims[-1][1]

    flat_weights = []
    for w_cat, bias in packed:
        flat_weights += [w_cat.astype(compute_dtype), bias.astype(jnp.float32)]

    # Time-major layout: the in-kernel time loop indexes the leading axis.
    x_tbd = jnp.transpose(x, (1, 0, 2)).astype(compute_dtype)       # (T, B, D0)

    # Inter-layer activation sequences stay in bf16 VMEM scratch (no HBM trip).
    scratch = [pltpu.VMEM((seq_len, batch, h), compute_dtype)
               for (_, h) in dims[:-1]]

    kernel = functools.partial(_stacked_lstm_kernel, dims, seq_len)
    return pl.pallas_call(
        kernel,
        out_shape=jax.ShapeDtypeStruct((batch, h_last), jnp.float32),
        scratch_shapes=scratch,
        # No grid: inputs/weights are whole-array VMEM residents (tiny here).
    )(x_tbd, *flat_weights)


class LSTMPallas:
    """JAX/Pallas equivalent of the PyTorch `LSTM` module (inference)."""

    def __init__(self, input_length, units, dropout, key,
                 compute_dtype=jnp.bfloat16):
        if not isinstance(units, list):
            raise ValueError("The number of units should be provided as a list.")
        self.units = units
        self.dropout = dropout          # identity at inference
        self.compute_dtype = compute_dtype

        self.params = []                # raw PyTorch-layout parameters (fp32)
        self.packed = []                # fused kernel operands
        self.dims = []
        d = input_length
        for h in units:
            k = 1.0 / (h ** 0.5)
            key, k1, k2, k3, k4 = jax.random.split(key, 5)
            # PyTorch LSTM default init: U(-1/sqrt(H), 1/sqrt(H))
            w_ih = jax.random.uniform(k1, (4 * h, d), jnp.float32, -k, k)
            w_hh = jax.random.uniform(k2, (4 * h, h), jnp.float32, -k, k)
            b_ih = jax.random.uniform(k3, (4 * h,), jnp.float32, -k, k)
            b_hh = jax.random.uniform(k4, (4 * h,), jnp.float32, -k, k)
            self.params.append((w_ih, w_hh, b_ih, b_hh))
            # Fused gate weight [W_ih^T ; W_hh^T] -> (D+H, 4H), folded bias.
            self.packed.append((jnp.concatenate([w_ih.T, w_hh.T], axis=0),
                                (b_ih + b_hh).reshape(1, 4 * h)))
            self.dims.append((d, h))
            d = h
        self.dims = tuple(self.dims)

    def __call__(self, x):
        # x: (samples, 1, length), batch_first — same as the PyTorch forward.
        # Dropout between blocks is inference identity (fused away).
        return lstm_stack_forward(x, self.packed, self.dims, self.compute_dtype)


def _reference_fp32(x, params):
    """Pure-JAX fp32 reference (PyTorch math) of the same stacked LSTM."""
    out = x.astype(jnp.float32)
    for (w_ih, w_hh, b_ih, b_hh) in params:
        B, T, _ = out.shape
        H = w_hh.shape[1]
        h = jnp.zeros((B, H), jnp.float32)
        c = jnp.zeros((B, H), jnp.float32)
        ys = []
        for t in range(T):
            g = out[:, t, :] @ w_ih.T + h @ w_hh.T + b_ih + b_hh
            i = jax.nn.sigmoid(g[:, 0 * H:1 * H])
            f = jax.nn.sigmoid(g[:, 1 * H:2 * H])
            gg = jnp.tanh(g[:, 2 * H:3 * H])
            o = jax.nn.sigmoid(g[:, 3 * H:4 * H])
            c = f * c + i * gg
            h = o * jnp.tanh(c)
            ys.append(h)
        out = jnp.stack(ys, axis=1)
    return out[:, -1, :]


def _reference_mirrored(x, params, compute_dtype):
    """Pure-JAX reference mirroring the kernel's precision policy exactly
    (bf16 matmul operands + bf16 inter-layer activations, fp32 everything else)."""
    B, T, _ = x.shape
    seq = x.astype(compute_dtype)
    h = None
    for (w_ih, w_hh, b_ih, b_hh) in params:
        H = w_hh.shape[1]
        w_cat = jnp.concatenate([w_ih.T, w_hh.T], axis=0).astype(compute_dtype)
        bias = (b_ih + b_hh).astype(jnp.float32)
        h = jnp.zeros((B, H), jnp.float32)
        c = jnp.zeros((B, H), jnp.float32)
        ys = []
        for t in range(T):
            xh = jnp.concatenate(
                [seq[:, t, :].astype(jnp.float32), h],
                axis=-1).astype(compute_dtype)
            g = jnp.dot(xh, w_cat, preferred_element_type=jnp.float32) + bias
            i = jax.nn.sigmoid(g[:, 0 * H:1 * H])
            f = jax.nn.sigmoid(g[:, 1 * H:2 * H])
            gg = jnp.tanh(g[:, 2 * H:3 * H])
            o = jax.nn.sigmoid(g[:, 3 * H:4 * H])
            c = f * c + i * gg
            h = o * jnp.tanh(c)
            ys.append(h.astype(compute_dtype))
        seq = jnp.stack(ys, axis=1)
    return h


if __name__ == "__main__":
    key = jax.random.PRNGKey(0)

    # Case 1: exactly the module's expected input: (samples, 1, length).
    key, xkey, pkey = jax.random.split(key, 3)
    batch, input_length, units, dropout = 2, 16, [32, 32], 0.1
    x = jax.random.normal(xkey, (batch, 1, input_length), dtype=jnp.float32)
    model = LSTMPallas(input_length, units, dropout, pkey)
    y = jax.block_until_ready(model(x))
    assert y.shape == (batch, units[-1]), y.shape

    y_mir = _reference_mirrored(x, model.params, model.compute_dtype)
    assert jnp.allclose(y, y_mir, atol=2e-3, rtol=2e-3), (
        float(jnp.max(jnp.abs(y - y_mir))))
    y_f32 = _reference_fp32(x, model.params)
    assert float(jnp.max(jnp.abs(y - y_f32))) < 1e-1, (
        float(jnp.max(jnp.abs(y - y_f32))))

    # Case 2: deeper stack + multi-step sequence (exercises the in-kernel time
    # loop and the bf16 inter-layer VMEM sequence buffers).
    key, xkey, pkey = jax.random.split(key, 3)
    batch2, seq_len2, input_length2, units2 = 2, 4, 10, [64, 32, 16]
    x2 = jax.random.normal(xkey, (batch2, seq_len2, input_length2), jnp.float32)
    model2 = LSTMPallas(input_length2, units2, 0.0, pkey)
    y2 = jax.block_until_ready(model2(x2))
    assert y2.shape == (batch2, units2[-1]), y2.shape

    y2_mir = _reference_mirrored(x2, model2.params, model2.compute_dtype)
    assert jnp.allclose(y2, y2_mir, atol=2e-3, rtol=2e-3), (
        float(jnp.max(jnp.abs(y2 - y2_mir))))
    y2_f32 = _reference_fp32(x2, model2.params)
    assert float(jnp.max(jnp.abs(y2 - y2_f32))) < 1e-1, (
        float(jnp.max(jnp.abs(y2 - y2_f32))))

    print("KERNEL_OK")
</pallas_src>

<mosaic_0001>
module attributes {stable_mosaic.version = 11 : i64} {
  func.func @_stacked_lstm_kernel(%arg0: memref<1x2x16xbf16, #tpu.memory_space<vmem>>, %arg1: memref<48x128xbf16, #tpu.memory_space<vmem>>, %arg2: memref<1x128xf32, #tpu.memory_space<vmem>>, %arg3: memref<64x128xbf16, #tpu.memory_space<vmem>>, %arg4: memref<1x128xf32, #tpu.memory_space<vmem>>, %arg5: memref<2x32xf32, #tpu.memory_space<vmem>>, %arg6: memref<1x2x32xbf16, #tpu.memory_space<vmem>>) attributes {dimension_semantics = [], scalar_prefetch = 0 : i64, scratch_operands = 1 : i64, tpu.core_type = #tpu.core_type<tc>} {
    %c0 = arith.constant 0 : index
    %c0_0 = arith.constant 0 : index
    %0 = vector.load %arg1[%c0, %c0_0] : memref<48x128xbf16, #tpu.memory_space<vmem>>, vector<48x128xbf16>
    %c0_1 = arith.constant 0 : index
    %c0_2 = arith.constant 0 : index
    %1 = vector.load %arg2[%c0_1, %c0_2] : memref<1x128xf32, #tpu.memory_space<vmem>>, vector<1x128xf32>
    %2 = vector.shape_cast %1 : vector<1x128xf32> to vector<1x128xf32>
    %3 = vector.broadcast %2 : vector<1x128xf32> to vector<2x128xf32>
    %cst = arith.constant 0.000000e+00 : f32
    %4 = vector.broadcast %cst : f32 to vector<2x32xf32>
    %cst_3 = arith.constant 0.000000e+00 : f32
    %5 = vector.broadcast %cst_3 : f32 to vector<2x32xf32>
    %c0_4 = arith.constant 0 : index
    %c0_5 = arith.constant 0 : index
    %c0_6 = arith.constant 0 : index
    %6 = vector.load %arg0[%c0_4, %c0_5, %c0_6] : memref<1x2x16xbf16, #tpu.memory_space<vmem>>, vector<1x2x16xbf16>
    %7 = vector.shape_cast %6 : vector<1x2x16xbf16> to vector<2x16xbf16>
    %8 = arith.extf %7 : vector<2x16xbf16> to vector<2x16xf32>
    %9 = tpu.concatenate %8, %4 in 1 : vector<2x16xf32>, vector<2x32xf32> -> vector<2x48xf32>
    %10 = arith.truncf %9 : vector<2x48xf32> to vector<2x48xbf16>
    %cst_7 = arith.constant dense<0.000000e+00> : vector<2x128xf32>
    %11 = tpu.matmul %10, %0, %cst_7 {dimension_numbers = #tpu.dot_dimension_numbers<[1], [0], [0], [1], [0, 0, 1, 1], [], []>} : vector<2x48xbf16>, vector<48x128xbf16>, vector<2x128xf32> -> vector<2x128xf32>
    %12 = arith.addf %11, %3 : vector<2x128xf32>
    %13 = vector.extract_strided_slice %12 {offsets = [0, 0], sizes = [2, 32], strides = [1, 1]} : vector<2x128xf32> to vector<2x32xf32>
    %14 = arith.negf %13 : vector<2x32xf32>
    %15 = math.exp %14 : vector<2x32xf32>
    %cst_8 = arith.constant 1.000000e+00 : f32
    %16 = vector.broadcast %cst_8 : f32 to vector<2x32xf32>
    %17 = arith.addf %16, %15 : vector<2x32xf32>
    %18 = arith.divf %16, %17 : vector<2x32xf32>
    %19 = vector.extract_strided_slice %12 {offsets = [0, 32], sizes = [2, 32], strides = [1, 1]} : vector<2x128xf32> to vector<2x32xf32>
    %20 = arith.negf %19 : vector<2x32xf32>
    %21 = math.exp %20 : vector<2x32xf32>
    %cst_9 = arith.constant 1.000000e+00 : f32
    %22 = vector.broadcast %cst_9 : f32 to vector<2x32xf32>
    %23 = arith.addf %22, %21 : vector<2x32xf32>
    %24 = arith.divf %22, %23 : vector<2x32xf32>
    %25 = vector.extract_strided_slice %12 {offsets = [0, 64], sizes = [2, 32], strides = [1, 1]} : vector<2x128xf32> to vector<2x32xf32>
    %26 = math.tanh %25 : vector<2x32xf32>
    %27 = vector.extract_strided_slice %12 {offsets = [0, 96], sizes = [2, 32], strides = [1, 1]} : vector<2x128xf32> to vector<2x32xf32>
    %28 = arith.negf %27 : vector<2x32xf32>
    %29 = math.exp %28 : vector<2x32xf32>
    %cst_10 = arith.constant 1.000000e+00 : f32
    %30 = vector.broadcast %cst_10 : f32 to vector<2x32xf32>
    %31 = arith.addf %30, %29 : vector<2x32xf32>
    %32 = arith.divf %30, %31 : vector<2x32xf32>
    %33 = arith.mulf %24, %5 : vector<2x32xf32>
    %34 = arith.mulf %18, %26 : vector<2x32xf32>
    %35 = arith.addf %33, %34 : vector<2x32xf32>
    %36 = math.tanh %35 : vector<2x32xf32>
    %37 = arith.mulf %32, %36 : vector<2x32xf32>
    %38 = arith.truncf %37 : vector<2x32xf32> to vector<2x32xbf16>
    %c0_11 = arith.constant 0 : index
    %c0_12 = arith.constant 0 : index
    %c0_13 = arith.constant 0 : index
    %39 = vector.load %arg6[%c0_11, %c0_12, %c0_13] : memref<1x2x32xbf16, #tpu.memory_space<vmem>>, vector<1x2x32xbf16>
    %40 = vector.shape_cast %39 : vector<1x2x32xbf16> to vector<2x32xbf16>
    %41 = vector.shape_cast %38 : vector<2x32xbf16> to vector<1x2x32xbf16>
    tpu.vector_store %arg6[%c0_11, %c0_12, %c0_13], %41 {strides = array<i32>} : memref<1x2x32xbf16, #tpu.memory_space<vmem>>, vector<1x2x32xbf16>,
    %c0_14 = arith.constant 0 : index
    %c0_15 = arith.constant 0 : index
    %42 = vector.load %arg3[%c0_14, %c0_15] : memref<64x128xbf16, #tpu.memory_space<vmem>>, vector<64x128xbf16>
    %c0_16 = arith.constant 0 : index
    %c0_17 = arith.constant 0 : index
    %43 = vector.load %arg4[%c0_16, %c0_17] : memref<1x128xf32, #tpu.memory_space<vmem>>, vector<1x128xf32>
    %44 = vector.shape_cast %43 : vector<1x128xf32> to vector<1x128xf32>
    %45 = vector.broadcast %44 : vector<1x128xf32> to vector<2x128xf32>
    %cst_18 = arith.constant 0.000000e+00 : f32
    %46 = vector.broadcast %cst_18 : f32 to vector<2x32xf32>
    %cst_19 = arith.constant 0.000000e+00 : f32
    %47 = vector.broadcast %cst_19 : f32 to vector<2x32xf32>
    %c0_20 = arith.constant 0 : index
    %c0_21 = arith.constant 0 : index
    %c0_22 = arith.constant 0 : index
    %48 = vector.load %arg6[%c0_20, %c0_21, %c0_22] : memref<1x2x32xbf16, #tpu.memory_space<vmem>>, vector<1x2x32xbf16>
    %49 = vector.shape_cast %48 : vector<1x2x32xbf16> to vector<2x32xbf16>
    %50 = arith.extf %49 : vector<2x32xbf16> to vector<2x32xf32>
    %51 = tpu.concatenate %50, %46 in 1 : vector<2x32xf32>, vector<2x32xf32> -> vector<2x64xf32>
    %52 = arith.truncf %51 : vector<2x64xf32> to vector<2x64xbf16>
    %cst_23 = arith.constant dense<0.000000e+00> : vector<2x128xf32>
    %53 = tpu.matmul %52, %42, %cst_23 {dimension_numbers = #tpu.dot_dimension_numbers<[1], [0], [0], [1], [0, 0, 1, 1], [], []>} : vector<2x64xbf16>, vector<64x128xbf16>, vector<2x128xf32> -> vector<2x128xf32>
    %54 = arith.addf %53, %45 : vector<2x128xf32>
    %55 = vector.extract_strided_slice %54 {offsets = [0, 0], sizes = [2, 32], strides = [1, 1]} : vector<2x128xf32> to vector<2x32xf32>
    %56 = arith.negf %55 : vector<2x32xf32>
    %57 = math.exp %56 : vector<2x32xf32>
    %cst_24 = arith.constant 1.000000e+00 : f32
    %58 = vector.broadcast %cst_24 : f32 to vector<2x32xf32>
    %59 = arith.addf %58, %57 : vector<2x32xf32>
    %60 = arith.divf %58, %59 : vector<2x32xf32>
    %61 = vector.extract_strided_slice %54 {offsets = [0, 32], sizes = [2, 32], strides = [1, 1]} : vector<2x128xf32> to vector<2x32xf32>
    %62 = arith.negf %61 : vector<2x32xf32>
    %63 = math.exp %62 : vector<2x32xf32>
    %cst_25 = arith.constant 1.000000e+00 : f32
    %64 = vector.broadcast %cst_25 : f32 to vector<2x32xf32>
    %65 = arith.addf %64, %63 : vector<2x32xf32>
    %66 = arith.divf %64, %65 : vector<2x32xf32>
    %67 = vector.extract_strided_slice %54 {offsets = [0, 64], sizes = [2, 32], strides = [1, 1]} : vector<2x128xf32> to vector<2x32xf32>
    %68 = math.tanh %67 : vector<2x32xf32>
    %69 = vector.extract_strided_slice %54 {offsets = [0, 96], sizes = [2, 32], strides = [1, 1]} : vector<2x128xf32> to vector<2x32xf32>
    %70 = arith.negf %69 : vector<2x32xf32>
    %71 = math.exp %70 : vector<2x32xf32>
    %cst_26 = arith.constant 1.000000e+00 : f32
    %72 = vector.broadcast %cst_26 : f32 to vector<2x32xf32>
    %73 = arith.addf %72, %71 : vector<2x32xf32>
    %74 = arith.divf %72, %73 : vector<2x32xf32>
    %75 = arith.mulf %66, %47 : vector<2x32xf32>
    %76 = arith.mulf %60, %68 : vector<2x32xf32>
    %77 = arith.addf %75, %76 : vector<2x32xf32>
    %78 = math.tanh %77 : vector<2x32xf32>
    %79 = arith.mulf %74, %78 : vector<2x32xf32>
    %c0_27 = arith.constant 0 : index
    %c0_28 = arith.constant 0 : index
    %80 = vector.load %arg5[%c0_27, %c0_28] : memref<2x32xf32, #tpu.memory_space<vmem>>, vector<2x32xf32>
    tpu.vector_store %arg5[%c0_27, %c0_28], %79 {strides = array<i32>} : memref<2x32xf32, #tpu.memory_space<vmem>>, vector<2x32xf32>,
    return
  }
}

</mosaic_0001>

<bundles_post_ra>
// kernel: tpu_custom_call.1
= control target key start
LH: loop header
LB: loop body
LE: loop exit
PB: predicated region body
PF: predicated region fallthrough
CT: control target
= control target key end

     0   :  { %10 = vsyncpa [#allocation4], 0  ;;  %s608_s0 = inlined_call_operand.hbm [shape: bf16[1,2,16], index: 0, kind: input, shape index: {}]   ;;  %s609_s1 = inlined_call_operand.hbm [shape: bf16[48,128], index: 1, kind: input, shape index: {}]   ;;  %s610_s2 = inlined_call_operand.vmem [shape: f32[1,128], index: 2, kind: input, shape index: {}]   ;;  %s611_s3 = inlined_call_operand.hbm [shape: bf16[64,128], index: 3, kind: input, shape index: {}]   ;;  %s612_s4 = inlined_call_operand.vmem [shape: f32[1,128], index: 4, kind: input, shape index: {}]   ;;  %s613_s5 = inlined_call_operand.hbm [shape: f32[2,32], index: 5, kind: output, shape index: {}]  }
   0x1   :  { %11 = vsyncpa [#allocation7], 0 }
   0x2   :  { %12 = vsyncpa [#allocation5], 0  ;;  %s491_s18 = smov [#allocation6]   ;;  %s397_s22 = scalar_lea.hbm %s609_s1, 384 }
   0x3   :  { %s28_s19 = sshll.u32 %s491_s18, 4  ;;  %p398_p0 = scmp.ne.s32.totalorder %s609_s1, %s397_s22  ;;  %s29_s19 = int_to_ptr.vmem [resolvable:$true] %s28_s19 }
   0x4   :  { %p401_p1 = scmp.lt.u32.totalorder %s397_s22, %s609_s1 }
   0x6   :  { %p403_p2 = pnand %p401_p1, %p398_p0 }
   0x8   :  { %406 = shalt.err (!%p403_p2)
}
   0x9   :  { %s407_s27 = scalar_lea.vmem %s29_s19, 384  ;;  %p412_p4 = scmp.lt.s32.totalorder %s29_s19, %s29_s19 }
   0xa   :  { %p408_p3 = scmp.ne.s32.totalorder %s29_s19, %s407_s27  ;;  %p413_p5 = scmp.lt.s32.totalorder %s407_s27, %s407_s27 }
   0xc   :  { %p414_p6 = por %p413_p5, %p412_p4 }
   0xe   :  { %p415_p7 = pnand %p414_p6, %p408_p3 }
  0x10   :  { %418 = shalt.err (!%p415_p7)
}
  0x11   :  { %s492_s28 = smov 64   ;;  %s493_s29 = smov 4  }
  0x12   :  { %34 = dma.hbm_to_vmem [thread:$0]  %s609_s1, 384, %s29_s19, [#allocation7], %s492_s28, %s492_s28, %s493_s29  }
  0x13   :  { %s494_s7 = smov [#allocation3]   ;;  %s495_s9 = smov [#allocation8]  }
  0x14   :  { %s19_s8 = sshll.u32 %s494_s7, 4  ;;  %s42_s10 = sshll.u32 %s495_s9, 4  ;;  %s20_s8 = int_to_ptr.vmem [resolvable:$true] %s19_s8  ;;  %s43_s10 = int_to_ptr.vmem [resolvable:$true] %s42_s10 }
  0x15   :  { %s419_s13 = scalar_lea.hbm %s608_s0, 16 }
  0x16   :  { %p420_p8 = scmp.ne.s32.totalorder %s608_s0, %s419_s13  ;;  %p423_p9 = scmp.lt.u32.totalorder %s419_s13, %s608_s0 }
  0x18   :  { %p425_p10 = pnand %p423_p9, %p420_p8 }
  0x1a   :  { %428 = shalt.err (!%p425_p10)
}
  0x1b   :  { %s429_s1 = scalar_lea.vmem %s20_s8, 16  ;;  %s433_s18 = scalar_lea.vmem %s20_s8, 32 }
  0x1c   :  { %p430_p11 = scmp.ne.s32.totalorder %s20_s8, %s429_s1  ;;  %p434_p12 = scmp.lt.s32.totalorder %s20_s8, %s20_s8 }
  0x1d   :  { %p435_p13 = scmp.lt.s32.totalorder %s433_s18, %s429_s1 }
  0x1f   :  { %p436_p0 = por %p435_p13, %p434_p12 }
  0x21   :  { %p437_p1 = pnand %p436_p0, %p430_p11 }
  0x23   :  { %440 = shalt.err (!%p437_p1)
}
  0x24   :  { %22 = dma.hbm_to_vmem [thread:$0]  %s608_s0, 16, %s20_s8, [#allocation4]  }
  0x25   :  { %s441_s23 = scalar_lea.hbm %s611_s3, 512 }
  0x26   :  { %p442_p2 = scmp.ne.s32.totalorder %s611_s3, %s441_s23  ;;  %p445_p3 = scmp.lt.u32.totalorder %s441_s23, %s611_s3 }
  0x28   :  { %p447_p4 = pnand %p445_p3, %p442_p2 }
  0x2a   :  { %450 = shalt.err (!%p447_p4)
}
  0x2b   :  { %s451_s30 = scalar_lea.vmem %s43_s10, 512  ;;  %p456_p6 = scmp.lt.s32.totalorder %s43_s10, %s43_s10 }
  0x2c   :  { %p452_p5 = scmp.ne.s32.totalorder %s43_s10, %s451_s30  ;;  %p457_p7 = scmp.lt.s32.totalorder %s451_s30, %s451_s30 }
  0x2e   :  { %p458_p8 = por %p457_p7, %p456_p6 }
  0x30   :  { %p459_p9 = pnand %p458_p8, %p452_p5 }
  0x32   :  { %462 = shalt.err (!%p459_p9)
}
  0x33   :  { %48 = dma.hbm_to_vmem [thread:$0]  %s611_s3, 512, %s43_s10, [#allocation7], %s492_s28, %s492_s28, %s493_s29  }
  0x34   :  { %485 = dma.done.wait [#allocation4], 16  }
  0x35   :  { %486 = vsyncadd [#allocation4], 4294967280 }
  0x36   :  { %487 = dma.done.wait [#allocation7], 896  }
  0x37   :  { %488 = vsyncadd [#allocation7], 4294966400  ;;  %v496_v0 = vmov 0.0   ;;  %vm497_vm0 = vmmov 0   ;;  %v374_v1 = vld [vmem:[#allocation6] sm:$0xff]   ;;  %v375_v2 = vld [vmem:[#allocation6 + $0x8] sm:$0xff]   ;;  %v170_v28 = vlaneseq }
  0x38   :  { %342 = vmatprep.subr.bf16.mxu0 %v496_v0  ;;  %348 = vmatprep.mubr.msk.bf16.mxu0 %vm497_vm0, %v496_v0  ;;  %v74_v3 = vld [vmem:[#allocation3] sm:$0x1]  ;;  %vm76_vm1 = vcmask 130048   ;;  %v376_v5 = vld [vmem:[#allocation6 + $0x10] sm:$0xff]   ;;  %vm97_vm2 = vcmask 392192   ;;  %s498_s7 = smov 32  }
  0x39   :  { %352 = vmatprep.subr.bf16.mxu1 %v496_v0  ;;  %360 = vmatprep.mubr.msk.bf16.mxu1 %vm497_vm0, %v496_v0  ;;  %v75_v4 = vunpack.c.l.bf16 %v74_v3  ;;  %v320_v8 = vld [vmem:[%s610_s2] ss:$0 sm:$0xff]  ;;  %v499_v26 = vmov 1966171168   ;;  %v378_v29 = vld [vmem:[#allocation8 + $0x8] sm:$0xff]   ;;  %v171_v31 = vshrl.u32 %v170_v28, 7 }
  0x3a   :  { %343 = vmatpush3.bf16.msra.mxu0 %v374_v1  ;;  %v377_v24 = vld [vmem:[#allocation8] sm:$0xff]   ;;  %v168_v27 = vunpack.c.l.s4 %v499_v26  ;;  %v379_v32 = vld [vmem:[#allocation8 + $0x10] sm:$0xff]   ;;  %v380_v36 = vld [vmem:[#allocation8 + $0x18] sm:$0xff]   ;;  %vm184_vm3 = vcmask 253952   ;;  %vm203_vm4 = vcmask 261120   ;;  %vm230_vm5 = vcmask 523264  }
  0x3b   :  { %344 = vmatprep.subr.bf16.mxu0 %v496_v0  ;;  %v77_v6 = vsel %vm76_vm1, %v75_v4, 0.0  ;;  %353 = vmatpush3.bf16.msra.mxu1 %v377_v24  ;;  %v326_v45 = vld [vmem:[%s612_s4] ss:$0 sm:$0xff]  ;;  %s500_s4 = smov [#allocation9]   ;;  %vm302_vm6 = vcmask 254976  }
  0x3c   :  { %v78_v7 = vpack.c.bf16 %v77_v6, %v77_v6  ;;  %354 = vmatprep.subr.bf16.mxu1 %v496_v0  ;;  %v169_v30 = vunpack.c.0.s8 %v168_v27  ;;  %s310_s9 = sshll.u32 %s500_s4, 4  ;;  %s311_s9 = int_to_ptr.vmem [resolvable:$true] %s310_s9 }
  0x3d   :  { %s463_s10 = scalar_lea.vmem %s311_s9, 32  ;;  %p468_p11 = scmp.lt.s32.totalorder %s311_s9, %s311_s9 }
  0x3e   :  { %345 = vmatpush3.bf16.msra.mxu0 %v375_v2  ;;  %v172_v34 = vsub.s32 %v169_v30, %v171_v31  ;;  %p464_p10 = scmp.ne.s32.totalorder %s311_s9, %s463_s10  ;;  %p469_p12 = scmp.lt.s32.totalorder %s463_s10, %s463_s10 }
  0x3f   :  { %346 = vmatprep.subr.bf16.mxu0 %v496_v0  ;;  %355 = vmatpush3.bf16.msra.mxu1 %v378_v29 }
  0x40   :  { %356 = vmatprep.subr.bf16.mxu1 %v496_v0  ;;  %p470_p13 = por %p469_p12, %p468_p11 }
  0x42   :  { %347 = vmatpush3.bf16.msra.mxu0 %v376_v5  ;;  %p471_p0 = pnand %p470_p13, %p464_p10 }
  0x43   :  { %357 = vmatpush3.bf16.msra.mxu1 %v379_v32 }
  0x44   :  { %358 = vmatprep.subr.bf16.mxu1 %v496_v0 }
  0x45   :  { %349 = vmatmul.mubr.msk.bf16.vlgmr.msra.gmra.mrb[0].mxu0 %vm97_vm2, %v78_v7 }
  0x47   :  { %359 = vmatpush3.bf16.msra.mxu1 %v380_v36 }
 0x118   :  { %v135_v9 = vpop.f32.mrb[0].mxu0 }
 0x119   :  { %v136_v10 = vadd.f32 %v320_v8, %v135_v9  ;;  %v350_v11 = vpop.f32.mrb[1].mxu0 }
 0x11a   :  { %v138_v12 = vpop.f32.mrb[2].mxu0 }
 0x11b   :  { %v351_v13 = vpop.f32.mrb[3].mxu0  ;;  %381 = vtanh.f32 %v136_v10  ;;  %v325_v15 = vmul.f32 -1.442695, %v136_v10 }
 0x11d   :  { %383 = vpow2.f32 %v325_v15 }
 0x125   :  { %v382_v14 = vpop.eup %381 }
 0x126   :  { %150 = vrot.lane.b32.xlu0 %v382_v14, %s492_s28 }
 0x127   :  { %v384_v16 = vpop.eup %383 }
 0x128   :  { %v144_v17 = vadd.f32 1.0, %v384_v16 }
 0x12a   :  { %385 = vrcp.f32 %v144_v17 }
 0x134   :  { %v386_v18 = vpop.eup %385 }
 0x135   :  { %v148_v21 = vmul.f32 0.0, %v386_v18 }
 0x198   :  { %v151_v19 = vpop.permute.xlu0 %150 }
 0x199   :  { %v153_v20 = vmul.f32 %v386_v18, %v151_v19 }
 0x19b   :  { %155 = vrot.lane.b32.xlu0 %v153_v20, %s498_s7 }
 0x20d   :  { %v156_v22 = vpop.permute.xlu0 %155 }
 0x20e   :  { %v158_v23 = vadd.f32 %v156_v22, %v148_v21 }
 0x210   :  { %387 = vtanh.f32 %v158_v23 }
 0x21a   :  { %v388_v25 = vpop.eup %387 }
 0x21b   :  { %161 = vrot.lane.b32.xlu1 %v388_v25, %s492_s28 }
 0x28d   :  { %v162_v33 = vpop.permute.xlu1 %161 }
 0x28e   :  { %v164_v35 = vmul.f32 %v386_v18, %v162_v33 }
 0x290   :  { %v165_v37 = vpack.c.bf16 %v164_v35, %v164_v35 }
 0x292   :  { %v173_v38 = vrot.slane %v165_v37, %v172_v34 }
 0x294   :  { %v180_v39 = vrot.slane %v173_v38, %v172_v34 }
 0x296   :  { %181 = vrot.lane.b32.xlu1 %v180_v39, %s498_s7 }
 0x308   :  { %v182_v40 = vpop.permute.xlu1 %181 }
 0x309   :  { %185 = vst.msk [vmem:[#allocation2] sm:$0x1] %vm184_vm3, %v182_v40 }
 0x310   :  { %v201_v41 = vld [vmem:[#allocation2] sm:$0x1] }
 0x311   :  { %v202_v42 = vunpack.c.l.bf16 %v201_v41 }
 0x313   :  { %v204_v43 = vsel %vm203_vm4, %v202_v42, 0.0 }
 0x314   :  { %v205_v44 = vpack.c.bf16 %v204_v43, %v204_v43 }
 0x316   :  { %361 = vmatmul.mubr.msk.bf16.vlgmr.msra.gmra.mrb[0].mxu1 %vm230_vm5, %v205_v44 }
 0x3e9   :  { %v268_v46 = vpop.f32.mrb[0].mxu1 }
 0x3ea   :  { %v269_v47 = vadd.f32 %v326_v45, %v268_v46  ;;  %v362_v48 = vpop.f32.mrb[1].mxu1 }
 0x3eb   :  { %v271_v49 = vpop.f32.mrb[2].mxu1 }
 0x3ec   :  { %389 = vtanh.f32 %v269_v47  ;;  %v363_v50 = vpop.f32.mrb[3].mxu1  ;;  %v332_v52 = vmul.f32 -1.442695, %v269_v47 }
 0x3ee   :  { %391 = vpow2.f32 %v332_v52 }
 0x3f6   :  { %v390_v51 = vpop.eup %389 }
 0x3f7   :  { %283 = vrot.lane.b32.xlu0 %v390_v51, %s492_s28 }
 0x3f8   :  { %v392_v53 = vpop.eup %391 }
 0x3f9   :  { %v277_v54 = vadd.f32 1.0, %v392_v53 }
 0x3fb   :  { %393 = vrcp.f32 %v277_v54 }
 0x405   :  { %v394_v55 = vpop.eup %393 }
 0x406   :  { %v281_v58 = vmul.f32 0.0, %v394_v55 }
 0x469   :  { %v284_v56 = vpop.permute.xlu0 %283 }
 0x46a   :  { %v286_v57 = vmul.f32 %v394_v55, %v284_v56 }
 0x46c   :  { %288 = vrot.lane.b32.xlu1 %v286_v57, %s498_s7 }
 0x4de   :  { %v289_v59 = vpop.permute.xlu1 %288 }
 0x4df   :  { %v291_v60 = vadd.f32 %v289_v59, %v281_v58 }
 0x4e1   :  { %395 = vtanh.f32 %v291_v60 }
 0x4eb   :  { %v396_v61 = vpop.eup %395 }
 0x4ec   :  { %294 = vrot.lane.b32.xlu0 %v396_v61, %s492_s28 }
 0x55e   :  { %v295_v62 = vpop.permute.xlu0 %294 }
 0x55f   :  { %v297_v63 = vmul.f32 %v394_v55, %v295_v62 }
 0x561   :  { %299 = vrot.lane.b32.xlu1 %v297_v63, %s498_s7 }
 0x5d3   :  { %v300_v0 = vpop.permute.xlu1 %299 }
 0x5d4   :  { %303 = vst.msk [vmem:[#allocation9] sm:$0x3] %vm302_vm6, %v300_v0 }
 0x5d5   :  { %474 = shalt.err (!%p471_p0)
}
 0x5d6   :  { %s475_s28 = scalar_lea.hbm %s613_s5, 32 }
 0x5d7   :  { %p476_p1 = scmp.ne.s32.totalorder %s613_s5, %s475_s28  ;;  %p479_p2 = scmp.lt.u32.totalorder %s475_s28, %s613_s5 }
 0x5d9   :  { %p481_p3 = pnand %p479_p2, %p476_p1 }
 0x5db   :  { %484 = shalt.err (!%p481_p3)
}
 0x5dc   :  { %313 = dma.vmem_to_hbm [thread:$0]  %s311_s9, 32, %s613_s5, [#allocation5]  }
 0x5dd   :  { %489 = dma.done.wait [#allocation5], 32  }
 0x5de   :  { %490 = vsyncadd [#allocation5], 4294967264 }
 0x5df   :  { %317 = vsyncpa [#allocation4], 1 }
 0x5e0   :  { %318 = vsyncpa [#allocation7], 1 }
 0x5e1   :  { %319 = vsyncpa [#allocation5], 1 }

</bundles_post_ra>
